<compile_context>
chip_gen: v6e
topology: v6e:2x2x1
jax: 0.10.0
libtpu: 0.0.40
codegen_flags: <defaults>
</compile_context>

<pallas_src>
import functools

import jax
import jax.numpy as jnp
from jax.experimental import pallas as pl
from jax.experimental.pallas import tpu as pltpu

_MIB = 1024 * 1024


def _embedding_kernel(x_ref, w_ref, scale_ref, shift_ref, o_ref):
    # x_ref:     (K, tL)    K = Cin (preact) or 4*Cin (2x2 pool folded into K)
    # w_ref:     (Cout, K)  conv weight (with 1/4 pool factor on pooled path)
    # scale_ref: (Cout, 1)  f32  gamma / sqrt(running_var + eps)
    # shift_ref: (Cout, 1)  f32  beta  - running_mean * scale
    # o_ref:     (Cout, tL) lane-dense output tile
    y = jnp.dot(w_ref[...], x_ref[...], preferred_element_type=jnp.float32)
    o_ref[...] = (y * scale_ref[...] + shift_ref[...]).astype(o_ref.dtype)


def _round_up(x, m):
    return -(-x // m) * m


def _vmem_plan():
    """(per-step working-set budget, vmem_limit_bytes), gated on the chip."""
    try:
        info = pltpu.get_tpu_info()
        cap = getattr(info, "vmem_capacity_bytes", None) or 64 * _MIB
    except Exception:            # conservative fallback if query unavailable
        cap = 64 * _MIB
    if cap <= 64 * _MIB:         # v7x-class: 64 MiB physical per TensorCore
        budget, limit = 40 * _MIB, 56 * _MIB
    else:                        # v5e / v6e: 128 MiB physical
        budget, limit = 72 * _MIB, 96 * _MIB
    limit = max(32 * _MIB, min(limit, cap - 8 * _MIB))
    budget = max(16 * _MIB, min(budget, limit - 8 * _MIB))
    return budget, limit


def _pick_lane_tile(lane_extent, K, Cout, in_item, out_item, other_steps, budget):
    """Largest lane tile (multiple of 128) whose full double-buffered working
    set (input + output blocks + weight + scale + shift) fits in `budget`."""
    if lane_extent <= 128:
        return lane_extent                       # full extent is always legal
    co_pad = _round_up(Cout, 8)
    fixed = (2 * co_pad * _round_up(K, 128) * in_item    # weight (2 buffers)
             + 2 * 2 * co_pad * 128 * 4)                  # scale+shift (2 bufs)
    avail = max(budget - fixed, 0)
    per_128 = 2 * 128 * (_round_up(K, 8) * in_item + co_pad * out_item)
    tiles = max(1, int(avail // per_128))
    tL = 128 * tiles
    tL = min(tL, max(128, (lane_extent // 128) * 128))
    if other_steps <= 1 and lane_extent >= 256:
        # keep >=2 grid steps so a 2-TensorCore chip (v7x) can split the work
        tL = min(tL, max(128, _round_up(pl.cdiv(lane_extent, 2), 128)))
    return tL


@functools.partial(jax.jit, static_argnames=("preact",))
def embedding_forward(x_nchw, weight, gamma, beta, running_mean, running_var,
                      preact=False, eps=1e-5):
    N, Cin, H, W = x_nchw.shape
    Cout = weight.shape[0]
    dtype = x_nchw.dtype
    wmat = weight.reshape(Cout, Cin).astype(jnp.float32)

    # BatchNorm (eval) as a per-channel affine applied to the f32 accumulator
    # inside the kernel (no precision loss from folding into the weight).
    scale = (gamma.astype(jnp.float32)
             / jnp.sqrt(running_var.astype(jnp.float32) + eps)).reshape(Cout, 1)
    shift = (beta.astype(jnp.float32).reshape(Cout, 1)
             - running_mean.astype(jnp.float32).reshape(Cout, 1) * scale)

    if not preact:
        # AvgPool2d(2,2) (floors odd dims) folded into the contraction:
        # K = 4*Cin window phases, weight replicated and pre-scaled by 1/4.
        Ho, Wo = H // 2, W // 2
        xc = x_nchw[:, :, : 2 * Ho, : 2 * Wo]
        x6 = xc.reshape(N, Cin, Ho, 2, Wo, 2)
        w_eff = jnp.concatenate([wmat] * 4, axis=1) * 0.25    # (Cout, 4*Cin)
        K = 4 * Cin
    else:
        Ho, Wo = H, W
        w_eff = wmat
        K = Cin
    w_eff = w_eff.astype(dtype)
    M = Ho * Wo

    in_item = jnp.dtype(dtype).itemsize
    out_item = in_item
    budget, vmem_limit = _vmem_plan()

    path_a = (M % 128 == 0)     # per-image pixel axis is already lane-dense
    if path_a:
        if not preact:
            # (N, ph_h, ph_w, Cin, Ho, Wo) -> (N, 4*Cin, Ho*Wo); flagged for
            # input fusion so the transpose does not cost a separate HBM pass.
            xk = jnp.transpose(x6, (0, 3, 5, 1, 2, 4)).reshape(N, K, M)
            fuse_x = True
        else:
            xk = x_nchw.reshape(N, K, M)          # free reshape, no copy
            fuse_x = False
        tL = _pick_lane_tile(M, K, Cout, in_item, out_item, N, budget)
        grid = (N, pl.cdiv(M, tL))
        in_specs = [
            pl.BlockSpec((None, K, tL), lambda b, j: (b, 0, j)),
            pl.BlockSpec((Cout, K), lambda b, j: (0, 0)),
            pl.BlockSpec((Cout, 1), lambda b, j: (0, 0)),
            pl.BlockSpec((Cout, 1), lambda b, j: (0, 0)),
        ]
        out_specs = pl.BlockSpec((None, Cout, tL), lambda b, j: (b, 0, j))
        out_shape = jax.ShapeDtypeStruct((N, Cout, M), dtype)
        dim_sem = ("parallel", "parallel")
    else:
        # Small / odd per-image maps: fold batch into the lane axis so every
        # load/store is lane-dense and each grid step does meaningful work.
        L = N * M
        if not preact:
            xk = jnp.transpose(x6, (3, 5, 1, 0, 2, 4)).reshape(K, L)
        else:
            xk = jnp.transpose(x_nchw.reshape(N, K, M), (1, 0, 2)).reshape(K, L)
        fuse_x = True
        tL = _pick_lane_tile(L, K, Cout, in_item, out_item, 1, budget)
        grid = (pl.cdiv(L, tL),)
        in_specs = [
            pl.BlockSpec((K, tL), lambda j: (0, j)),
            pl.BlockSpec((Cout, K), lambda j: (0, 0)),
            pl.BlockSpec((Cout, 1), lambda j: (0, 0)),
            pl.BlockSpec((Cout, 1), lambda j: (0, 0)),
        ]
        out_specs = pl.BlockSpec((Cout, tL), lambda j: (0, j))
        out_shape = jax.ShapeDtypeStruct((Cout, L), dtype)
        dim_sem = ("parallel",)

    compiler_params = pltpu.CompilerParams(
        dimension_semantics=dim_sem,
        vmem_limit_bytes=int(vmem_limit),
        # Let XLA fuse the transpose producer of x into the pallas_call input
        # pipeline instead of materializing it in HBM (review item 1).
        allow_input_fusion=([True, False, False, False] if fuse_x else None),
    )

    out = pl.pallas_call(
        _embedding_kernel,
        out_shape=out_shape,
        grid_spec=pltpu.PrefetchScalarGridSpec(
            num_scalar_prefetch=0,
            grid=grid,
            in_specs=in_specs,
            out_specs=out_specs,
        ),
        compiler_params=compiler_params,
    )(xk, w_eff, scale, shift)

    if path_a:
        return out.reshape(N, Cout, Ho, Wo)       # already NCHW, free reshape
    # TODO(synk): trailing (Cout,N,M)->(N,Cout,M) transpose is one extra HBM
    # pass; only taken when the per-image map is lane-sparse, where dense
    # lane stores are worth more than that pass.
    return jnp.transpose(out.reshape(Cout, N, M), (1, 0, 2)).reshape(N, Cout, Ho, Wo)


def _reference_forward(x_nchw, weight, gamma, beta, running_mean, running_var,
                       preact=False, eps=1e-5):
    x = x_nchw.astype(jnp.float32)
    if not preact:
        N, C, H, W = x.shape
        x = x[:, :, : 2 * (H // 2), : 2 * (W // 2)]
        x = x.reshape(N, C, H // 2, 2, W // 2, 2).mean(axis=(3, 5))
    y = jnp.einsum("nchw,oc->nohw", x, weight.reshape(weight.shape[0], -1))
    scale = gamma / jnp.sqrt(running_var + eps)
    shift = beta - running_mean * scale
    return y * scale[None, :, None, None] + shift[None, :, None, None]


if __name__ == "__main__":
    key = jax.random.PRNGKey(0)
    k_x, k_w, k_g, k_b, k_m, k_v = jax.random.split(key, 6)

    inplanes, planes = 4, 8
    N, H, W = 2, 16, 16

    x = jax.random.normal(k_x, (N, inplanes, H, W), dtype=jnp.float32)
    # Conv2d(inplanes, planes, 1, bias=False) -> weight (planes, inplanes, 1, 1)
    weight = jax.random.normal(k_w, (planes, inplanes, 1, 1), jnp.float32) * 0.1
    # BatchNorm2d(planes) parameters / running stats
    gamma = 1.0 + 0.1 * jax.random.normal(k_g, (planes,), jnp.float32)
    beta = 0.1 * jax.random.normal(k_b, (planes,), jnp.float32)
    running_mean = 0.05 * jax.random.normal(k_m, (planes,), jnp.float32)
    running_var = 1.0 + 0.1 * jnp.abs(jax.random.normal(k_v, (planes,), jnp.float32))

    for preact in (False, True):
        out = embedding_forward(x, weight, gamma, beta, running_mean,
                                running_var, preact=preact)
        out = jax.block_until_ready(out)
        ref = _reference_forward(x, weight, gamma, beta, running_mean,
                                 running_var, preact=preact)
        assert out.shape == ref.shape, (out.shape, ref.shape)
        assert jnp.allclose(out, ref, rtol=1e-4, atol=1e-5), \
            f"mismatch vs reference (preact={preact})"

    print("KERNEL_OK")
</pallas_src>

<mosaic_0001>
module attributes {stable_mosaic.version = 11 : i64} {
  func.func @_embedding_kernel(%arg0: i32, %arg1: memref<16x128xf32, #tpu.memory_space<vmem>>, %arg2: memref<8x16xf32, #tpu.memory_space<vmem>>, %arg3: memref<8x1xf32, #tpu.memory_space<vmem>>, %arg4: memref<8x1xf32, #tpu.memory_space<vmem>>, %arg5: memref<8x128xf32, #tpu.memory_space<vmem>>) attributes {dimension_semantics = [#tpu.dimension_semantics<parallel>], iteration_bounds = array<i64: 1>, scalar_prefetch = 0 : i64, scratch_operands = 0 : i64, tpu.core_type = #tpu.core_type<tc>, window_params = [{transform_indices = @transform_0, window_bounds = array<i64: 16, 128>}, {pipeline_mode = #tpu.pipeline_mode<synchronous>, transform_indices = @transform_1, window_bounds = array<i64: 8, 16>}, {pipeline_mode = #tpu.pipeline_mode<synchronous>, transform_indices = @transform_2, window_bounds = array<i64: 8, 1>}, {pipeline_mode = #tpu.pipeline_mode<synchronous>, transform_indices = @transform_3, window_bounds = array<i64: 8, 1>}, {transform_indices = @transform_4, window_bounds = array<i64: 8, 128>}]} {
    %c0 = arith.constant 0 : index
    %c0_0 = arith.constant 0 : index
    %0 = vector.load %arg2[%c0, %c0_0] : memref<8x16xf32, #tpu.memory_space<vmem>>, vector<8x16xf32>
    %c0_1 = arith.constant 0 : index
    %c0_2 = arith.constant 0 : index
    %1 = vector.load %arg1[%c0_1, %c0_2] : memref<16x128xf32, #tpu.memory_space<vmem>>, vector<16x128xf32>
    %cst = arith.constant dense<0.000000e+00> : vector<8x128xf32>
    %2 = tpu.matmul %0, %1, %cst {dimension_numbers = #tpu.dot_dimension_numbers<[1], [0], [0], [1], [0, 0, 1, 1], [], []>} : vector<8x16xf32>, vector<16x128xf32>, vector<8x128xf32> -> vector<8x128xf32>
    %c0_3 = arith.constant 0 : index
    %c0_4 = arith.constant 0 : index
    %3 = vector.load %arg3[%c0_3, %c0_4] : memref<8x1xf32, #tpu.memory_space<vmem>>, vector<8x1xf32>
    %4 = vector.broadcast %3 : vector<8x1xf32> to vector<8x128xf32>
    %5 = arith.mulf %2, %4 : vector<8x128xf32>
    %c0_5 = arith.constant 0 : index
    %c0_6 = arith.constant 0 : index
    %6 = vector.load %arg4[%c0_5, %c0_6] : memref<8x1xf32, #tpu.memory_space<vmem>>, vector<8x1xf32>
    %7 = vector.broadcast %6 : vector<8x1xf32> to vector<8x128xf32>
    %8 = arith.addf %5, %7 : vector<8x128xf32>
    %c0_7 = arith.constant 0 : index
    %c0_8 = arith.constant 0 : index
    %9 = vector.load %arg5[%c0_7, %c0_8] : memref<8x128xf32, #tpu.memory_space<vmem>>, vector<8x128xf32>
    tpu.vector_store %arg5[%c0_7, %c0_8], %8 {strides = array<i32>} : memref<8x128xf32, #tpu.memory_space<vmem>>, vector<8x128xf32>,
    return
  }
  func.func @transform_0(%arg0: i32) -> (i32, i32) {
    %c0_i32 = arith.constant 0 : i32
    %c0_i32_0 = arith.constant 0 : i32
    return %c0_i32, %arg0 : i32, i32
  }
  func.func @transform_1(%arg0: i32) -> (i32, i32) {
    %c0_i32 = arith.constant 0 : i32
    %c0_i32_0 = arith.constant 0 : i32
    %c0_i32_1 = arith.constant 0 : i32
    return %c0_i32, %c0_i32_0 : i32, i32
  }
  func.func @transform_2(%arg0: i32) -> (i32, i32) {
    %c0_i32 = arith.constant 0 : i32
    %c0_i32_0 = arith.constant 0 : i32
    %c0_i32_1 = arith.constant 0 : i32
    return %c0_i32, %c0_i32_0 : i32, i32
  }
  func.func @transform_3(%arg0: i32) -> (i32, i32) {
    %c0_i32 = arith.constant 0 : i32
    %c0_i32_0 = arith.constant 0 : i32
    %c0_i32_1 = arith.constant 0 : i32
    return %c0_i32, %c0_i32_0 : i32, i32
  }
  func.func @transform_4(%arg0: i32) -> (i32, i32) {
    %c0_i32 = arith.constant 0 : i32
    %c0_i32_0 = arith.constant 0 : i32
    return %c0_i32, %arg0 : i32, i32
  }
}

</mosaic_0001>

<bundles_post_ra>
// kernel: embedding_forward.1
= control target key start
LH: loop header
LB: loop body
LE: loop exit
PB: predicated region body
PF: predicated region fallthrough
CT: control target
= control target key end

     0   :  { %v128_v0 = vmov 0.0   ;;  %vm129_vm0 = vmmov 0   ;;  %vm20_vm1 = vcmask 130048   ;;  %v130_v4 = vmov 0   ;;  %s174_s0 = inlined_call_operand.vmem [shape: f32[16,128], index: 0, kind: input, shape index: {}]   ;;  %s175_s1 = inlined_call_operand.vmem [shape: f32[8,16], index: 1, kind: input, shape index: {}]   ;;  %s176_s2 = inlined_call_operand.vmem [shape: f32[8,1], index: 2, kind: input, shape index: {}]   ;;  %s177_s3 = inlined_call_operand.vmem [shape: f32[8,1], index: 3, kind: input, shape index: {}]   ;;  %s178_s4 = inlined_call_operand.vmem [shape: f32[8,128], index: 4, kind: output, shape index: {}]  }
   0x1   :  { %117 = vmatprep.subr.mxu0 %v128_v0  ;;  %v19_v1 = vld [vmem:[%s174_s0 + $0x8] sm:$0xff]  ;;  %v18_v2 = vld [vmem:[%s174_s0] sm:$0xff]  ;;  %121 = vmatprep.mubr.msk.f32.mxu0 %vm129_vm0, %v128_v0 }
   0x2   :  { %118 = vmatpush3.msra.mxu0 %v19_v1  ;;  %v17_v3 = vld [vmem:[%s175_s1] sm:$0xff]  ;;  %127 = vset.pattern.permute.xlu0 %v130_v4 }
   0x3   :  { %v94_v5 = vld [vmem:[%s176_s2] sm:$0xff]  ;;  %119 = vmatprep.subr.mxu0 %v128_v0 }
   0x4   :  { %97 = vperm.xlu0 %127, %v94_v5   ;;  %120 = vmatpush3.msra.mxu0 %v18_v2  ;;  %v101_v6 = vld [vmem:[%s177_s3] sm:$0xff] }
   0x5   :  { %122 = vmatmul.mubr.msk.f32.vlgmr.msra.gmra.mxu0 %vm20_vm1, %v17_v3 }
   0x8   :  { %104 = vperm.xlu0 %127, %v101_v6  }
  0x7f   :  { %v98_v7 = vpop.permute.xlu0 %97 }
  0x83   :  { %v105_v10 = vpop.permute.xlu0 %104 }
  0xc5   :  { %v90_v8 = vpop.f32.mrf.mxu0 }
  0xc6   :  { %v100_v9 = vmul.f32 %v98_v7, %v90_v8 }
  0xc7   :  { %v123_v11 = vpop.f32.mrf.mxu0 }
  0xc8   :  { %v107_v12 = vadd.f32 %v105_v10, %v100_v9 }
  0xca   :  { %108 = vst [vmem:[%s178_s4] sm:$0xff] %v107_v12 }

</bundles_post_ra>
